<compile_context>
chip_gen: v7x
topology: tpu7x:2x2x1
jax: 0.10.0
libtpu: 0.0.40
codegen_flags: <defaults>
</compile_context>

<pallas_src>
import functools

import jax
import jax.numpy as jnp
from jax.experimental import pallas as pl
from jax.experimental.pallas import tpu as pltpu


def _embedding_kernel(x_ref, w1_ref, w2_ref, o_ref, *, compute_dtype):
    # x_ref : (C_in, tile_L)   input dtype (cast in-kernel, not in wrapper)
    # w1_ref: (C_out, C_in)    compute dtype (VMEM resident)
    # w2_ref: (C_out, C_out)   compute dtype (VMEM resident)
    # o_ref : (C_out, tile_L)  output dtype (bf16 by default)
    x = x_ref[...].astype(compute_dtype)          # tiny (C_in, tile_L) cast: VPU filler
    h = jnp.dot(w1_ref[...], x, preferred_element_type=jnp.float32)
    h = jnp.maximum(h, 0.0)                       # ReLU after cnn1 (+ res1 == 0), f32
    y = jnp.dot(w2_ref[...], h.astype(compute_dtype),
                preferred_element_type=jnp.float32)
    y = jnp.maximum(y, 0.0)                       # ReLU after cnn2 (+ res2 == 0), f32
    o_ref[...] = y.astype(o_ref.dtype)


def _pick_tile(L, max_cols):
    """Pick (tile_l, num_l, needs_pad) with no padding whenever possible."""
    if L <= max_cols:
        return L, 1, False                         # block == full dim: always legal
    # Largest 128-multiple divisor of L that fits max_cols (no pad, no tail).
    start = max_cols - (max_cols % 128)
    for t in range(start, 127, -128):
        if L % t == 0:
            return t, L // t, False
    # Rare fallback: lane-aligned tiles with a zero-padded tail.
    # Correct only because relu(W @ 0) = 0 and res = 0 (padded cols stay 0
    # and are sliced off); revisit if bias / residual variants are enabled.
    num = pl.cdiv(L, max_cols)
    t = ((pl.cdiv(L, num) + 127) // 128) * 128
    return t, num, True


def embedding_forward(x_nchw, w1, w2, *, max_tile_cols=8192,
                      compute_dtype=jnp.bfloat16, out_dtype=jnp.bfloat16):
    """Fused mode=1 Embedding forward.

    x_nchw: (B, C_in, P, T)
    w1:     (C_out, C_in)   -- Conv2d(C_in, C_out, 1).weight squeezed
    w2:     (C_out, C_out)  -- Conv2d(C_out, C_out, 1).weight squeezed
    """
    B, C_in, P, T = x_nchw.shape
    C_out = w1.shape[0]
    L = P * T

    # NCHW -> (B, C_in, L) is a free reshape (no transpose, no HBM pass).
    x = x_nchw.reshape(B, C_in, L)

    tile_l, num_l, needs_pad = _pick_tile(L, max_tile_cols)
    # v7x has 2 TensorCores: make sure the parallel grid has >= 2 steps.
    if B * num_l < 2 and L % 256 == 0:
        tile_l, num_l, needs_pad = L // 2, 2, False
    l_pad = tile_l * num_l
    if needs_pad:
        x = jnp.pad(x, ((0, 0), (0, 0), (0, l_pad - L)))

    # Weight casts are 2 KB total -> negligible; x stays in its native dtype.
    w1c = w1.astype(compute_dtype)
    w2c = w2.astype(compute_dtype)

    kernel = functools.partial(_embedding_kernel, compute_dtype=compute_dtype)

    out = pl.pallas_call(
        kernel,
        out_shape=jax.ShapeDtypeStruct((B, C_out, l_pad), out_dtype),
        grid_spec=pltpu.PrefetchScalarGridSpec(
            num_scalar_prefetch=0,
            grid=(B, num_l),
            in_specs=[
                # batch dim squeezed -> kernel sees (C_in, tile_l)
                pl.BlockSpec((pl.Squeezed(), C_in, tile_l),
                             lambda b, l: (b, 0, l)),
                # weights: constant block -> VMEM resident across grid
                pl.BlockSpec((C_out, C_in), lambda b, l: (0, 0)),
                pl.BlockSpec((C_out, C_out), lambda b, l: (0, 0)),
            ],
            out_specs=pl.BlockSpec((pl.Squeezed(), C_out, tile_l),
                                   lambda b, l: (b, 0, l)),
        ),
        compiler_params=pltpu.CompilerParams(
            dimension_semantics=("parallel", "parallel"),
            vmem_limit_bytes=32 << 20),   # v5e default scoped is 16 MiB
    )(x, w1c, w2c)

    if l_pad != L:
        out = out[:, :, :L]
    return out.reshape(B, C_out, P, T)


def _reference_forward(x_nchw, w1, w2, compute_dtype=jnp.bfloat16,
                       out_dtype=jnp.bfloat16):
    # Pure-JAX reference following the same numeric path (bf16 operands,
    # f32 accumulation, f32 ReLU) for a tight comparison.
    B, C_in, P, T = x_nchw.shape
    C_out = w1.shape[0]
    x = x_nchw.reshape(B, C_in, P * T).astype(compute_dtype)
    w1c = w1.astype(compute_dtype)
    w2c = w2.astype(compute_dtype)
    h = jnp.maximum(
        jnp.einsum("oc,bcl->bol", w1c, x, preferred_element_type=jnp.float32),
        0.0)
    y = jnp.maximum(
        jnp.einsum("oc,bcl->bol", w2c, h.astype(compute_dtype),
                   preferred_element_type=jnp.float32),
        0.0)
    return y.astype(out_dtype).reshape(B, C_out, P, T)


if __name__ == "__main__":
    # Shapes consistent with sgn Embedding: (batch, in_channels, num_point, step)
    B, C_in, C_out, P, T = 2, 4, 32, 25, 16
    key = jax.random.PRNGKey(0)
    kx, k1, k2 = jax.random.split(key, 3)

    x = jax.random.normal(kx, (B, C_in, P, T), dtype=jnp.float32)
    # Deterministic stand-in for Conv2d kaiming-uniform; 1x1 conv weights
    # (C_out, C_in, 1, 1) stored as (C_out, C_in) matmul weights.
    w1 = jax.random.normal(k1, (C_out, C_in), dtype=jnp.float32) * (1.0 / C_in) ** 0.5
    w2 = jax.random.normal(k2, (C_out, C_out), dtype=jnp.float32) * (1.0 / C_out) ** 0.5

    out = jax.block_until_ready(embedding_forward(x, w1, w2))
    ref = _reference_forward(x, w1, w2)

    assert out.shape == (B, C_out, P, T)
    err = float(jnp.max(jnp.abs(out.astype(jnp.float32) - ref.astype(jnp.float32))))
    assert err < 3e-2, err

    print("KERNEL_OK")
</pallas_src>

<mosaic_0001>
module attributes {stable_mosaic.version = 11 : i64} {
  func.func @_embedding_kernel(%arg0: i32, %arg1: i32, %arg2: memref<1x4x400xf32, #tpu.memory_space<vmem>>, %arg3: memref<32x4xbf16, #tpu.memory_space<vmem>>, %arg4: memref<32x32xbf16, #tpu.memory_space<vmem>>, %arg5: memref<1x32x400xbf16, #tpu.memory_space<vmem>>) attributes {dimension_semantics = [#tpu.dimension_semantics<parallel>, #tpu.dimension_semantics<parallel>], iteration_bounds = array<i64: 2, 1>, scalar_prefetch = 0 : i64, scratch_operands = 0 : i64, tpu.core_type = #tpu.core_type<tc>, window_params = [{transform_indices = @transform_0, window_bounds = array<i64: 1, 4, 400>}, {pipeline_mode = #tpu.pipeline_mode<synchronous>, transform_indices = @transform_1, window_bounds = array<i64: 32, 4>}, {pipeline_mode = #tpu.pipeline_mode<synchronous>, transform_indices = @transform_2, window_bounds = array<i64: 32, 32>}, {transform_indices = @transform_3, window_bounds = array<i64: 1, 32, 400>}]} {
    %c0 = arith.constant 0 : index
    %c0_0 = arith.constant 0 : index
    %c0_1 = arith.constant 0 : index
    %0 = vector.load %arg2[%c0, %c0_0, %c0_1] : memref<1x4x400xf32, #tpu.memory_space<vmem>>, vector<1x4x400xf32>
    %1 = vector.shape_cast %0 : vector<1x4x400xf32> to vector<4x400xf32>
    %2 = arith.truncf %1 : vector<4x400xf32> to vector<4x400xbf16>
    %c0_2 = arith.constant 0 : index
    %c0_3 = arith.constant 0 : index
    %3 = vector.load %arg3[%c0_2, %c0_3] : memref<32x4xbf16, #tpu.memory_space<vmem>>, vector<32x4xbf16>
    %cst = arith.constant dense<0.000000e+00> : vector<32x400xf32>
    %4 = tpu.matmul %3, %2, %cst {dimension_numbers = #tpu.dot_dimension_numbers<[1], [0], [0], [1], [0, 0, 1, 1], [], []>} : vector<32x4xbf16>, vector<4x400xbf16>, vector<32x400xf32> -> vector<32x400xf32>
    %cst_4 = arith.constant 0.000000e+00 : f32
    %5 = vector.broadcast %cst_4 : f32 to vector<32x400xf32>
    %6 = arith.maximumf %4, %5 : vector<32x400xf32>
    %c0_5 = arith.constant 0 : index
    %c0_6 = arith.constant 0 : index
    %7 = vector.load %arg4[%c0_5, %c0_6] : memref<32x32xbf16, #tpu.memory_space<vmem>>, vector<32x32xbf16>
    %8 = arith.truncf %6 : vector<32x400xf32> to vector<32x400xbf16>
    %cst_7 = arith.constant dense<0.000000e+00> : vector<32x400xf32>
    %9 = tpu.matmul %7, %8, %cst_7 {dimension_numbers = #tpu.dot_dimension_numbers<[1], [0], [0], [1], [0, 0, 1, 1], [], []>} : vector<32x32xbf16>, vector<32x400xbf16>, vector<32x400xf32> -> vector<32x400xf32>
    %cst_8 = arith.constant 0.000000e+00 : f32
    %10 = vector.broadcast %cst_8 : f32 to vector<32x400xf32>
    %11 = arith.maximumf %9, %10 : vector<32x400xf32>
    %12 = arith.truncf %11 : vector<32x400xf32> to vector<32x400xbf16>
    %c0_9 = arith.constant 0 : index
    %c0_10 = arith.constant 0 : index
    %c0_11 = arith.constant 0 : index
    %13 = vector.load %arg5[%c0_9, %c0_10, %c0_11] : memref<1x32x400xbf16, #tpu.memory_space<vmem>>, vector<1x32x400xbf16>
    %14 = vector.shape_cast %13 : vector<1x32x400xbf16> to vector<32x400xbf16>
    %15 = vector.shape_cast %12 : vector<32x400xbf16> to vector<1x32x400xbf16>
    tpu.vector_store %arg5[%c0_9, %c0_10, %c0_11], %15 {strides = array<i32>} : memref<1x32x400xbf16, #tpu.memory_space<vmem>>, vector<1x32x400xbf16>,
    return
  }
  func.func @transform_0(%arg0: i32, %arg1: i32) -> (i32, i32, i32) {
    %c0_i32 = arith.constant 0 : i32
    %c0_i32_0 = arith.constant 0 : i32
    return %arg0, %c0_i32, %arg1 : i32, i32, i32
  }
  func.func @transform_1(%arg0: i32, %arg1: i32) -> (i32, i32) {
    %c0_i32 = arith.constant 0 : i32
    %c0_i32_0 = arith.constant 0 : i32
    %c0_i32_1 = arith.constant 0 : i32
    return %c0_i32, %c0_i32_0 : i32, i32
  }
  func.func @transform_2(%arg0: i32, %arg1: i32) -> (i32, i32) {
    %c0_i32 = arith.constant 0 : i32
    %c0_i32_0 = arith.constant 0 : i32
    %c0_i32_1 = arith.constant 0 : i32
    return %c0_i32, %c0_i32_0 : i32, i32
  }
  func.func @transform_3(%arg0: i32, %arg1: i32) -> (i32, i32, i32) {
    %c0_i32 = arith.constant 0 : i32
    %c0_i32_0 = arith.constant 0 : i32
    return %arg0, %c0_i32, %arg1 : i32, i32, i32
  }
}

</mosaic_0001>

<bundles_post_ra>
// kernel: tpu_custom_call.1
= control target key start
LH: loop header
LB: loop body
LE: loop exit
PB: predicated region body
PF: predicated region fallthrough
CT: control target
= control target key end

     0   :  { %8 = vsyncpa [#allocation3], 0  ;;  %s1164_s0 = inlined_call_operand.hbm [shape: f32[2,4,400], index: 0, kind: input, shape index: {}]   ;;  %s1165_s1 = inlined_call_operand.vmem [shape: bf16[32,4], index: 1, kind: input, shape index: {}]   ;;  %s1166_s2 = inlined_call_operand.vmem [shape: bf16[32,32], index: 2, kind: input, shape index: {}]   ;;  %s1167_s3 = inlined_call_operand.hbm [shape: bf16[2,32,400], index: 3, kind: output, shape index: {}]  }
   0x1   :  { %10 = vsyncpa [#allocation3 + $0x1], 0 }
   0x2   :  { %11 = vsyncpa [#allocation4], 0 }
   0x3   :  { %13 = vsyncpa [#allocation4 + $0x1], 0  ;;  %s946_s12 = smov 0   ;;  %s948_s13 = smov 0  }
   0x4   :  { %s950_s14 = smov 0   ;;  %s952_s15 = smov 0  }
   0x5   :  { %s954_s16 = smov 0   ;;  %s956_s17 = smov 0  }
   0x6 LB: > { %s689_s18 = sadd.s32 4294967295, %s919_s17   ;;  %s690_s19 = sadd.s32 4294967294, %s919_s17   ;;  %s919_s17 = sphi %s956_s17, %s19_s17   ;;  %s915_s16 = sphi %s954_s16, %s1185_s16   ;;  %s911_s15 = sphi %s952_s15, %s1184_s15   ;;  %s907_s14 = sphi %s950_s14, %s1183_s14   ;;  %s903_s13 = sphi %s948_s13, %s1182_s13   ;;  %s899_s12 = sphi %s946_s12, %s1181_s12  }
   0x7   : > { %s31_s20 = sadd.s32 1, %s915_s16  ;;  %s40_s21 = sadd.s32 1, %s907_s14 }
   0x8   : > { %p33_p0 = scmp.ge.s32.totalorder %s31_s20, 2  ;;  %p47_p1 = scmp.ne.s32.totalorder %s907_s14, %s903_s13 }
   0x9   : > { %p48_p2 = scmp.eq.s32.totalorder %s919_s17, 0  ;;  %p53_p3 = scmp.ne.s32.totalorder %s903_s13, %s899_s12 }
   0xa   : > { %s1187_s20 = smov (%p33_p0, %s31_s20), 0  ;;  %p54_p5 = scmp.eq.s32.totalorder %s689_s18, 0 }
   0xb   : > { %p987_p4 = por %p48_p2, %p47_p1  ;;  %s35_s23 = ssub.s32 %s915_s16, %s1187_s20 }
   0xc   : > { %p121_p6 = scmp.eq.s32.totalorder %s689_s18, 1  ;;  %p38_p7 = scmp.eq.s32.totalorder %s35_s23, 0 }
   0xd   : > { %p993_p8 = por %p54_p5, %p53_p3  ;;  %p127_p10 = scmp.eq.s32.totalorder %s690_s19, 1 }
   0xe   : > { %p997_p9 = por %p121_p6, %p47_p1  ;;  %p748_p13 = scmp.lt.s32.totalorder %s919_s17, 2 }
   0xf   : > { %s1002_s26 = scalar_select %p38_p7, %s907_s14, %s40_s21  }
  0x10   : > { %s1171_s25 = scalar_select %p997_p9, 1, 0 }
  0x11   : > { %p1004_p11 = por %p127_p10, %p53_p3  ;;  %s153_s28 = sand.u32 1, %s907_s14  }
  0x12   : > { %s693_s29 = sshll.u32 %s153_s28, 4  ;;  %s726_s30 = sshll.u32 %s915_s16, 8 }
  0x13   : > { %s1172_s27 = scalar_select %p1004_p11, 1, 0 }
  0x14   : > { %s1015_s6 = scalar_lea.hbm %s1164_s0, %s726_s30  ;;  %s157_s7 = scalar_lea.vmem [#allocation2], %s693_s29 }
  0x15   : > { %s167_s8 = sshll.u32 %s157_s7, 4  ;;  %p1021_p0 = pnand %p748_p13, %p987_p4  ;;  %s1017_s8 = int_to_ptr.vmem [resolvable:$true] %s167_s8 }
  0x16   : > { %s154_s10 = scalar_lea.sflag [#allocation3], %s153_s28  ;;  %s807_s11 = scalar_lea.hbm %s1015_s6, 256 }
  0x17   : > { %p808_p3 = scmp.ne.s32.totalorder %s1015_s6, %s807_s11  ;;  %p809_p5 = pneg %p1021_p0 }
  0x18   : > { %s812_s21 = scalar_lea.hbm %s1164_s0, 512  ;;  %p813_p4 = scmp.lt.u32.totalorder %s1015_s6, %s1164_s0 }
  0x19   : > { %p810_p6 = pnand %p809_p5, %p808_p3  ;;  %p814_p10 = scmp.lt.u32.totalorder %s812_s21, %s807_s11 }
  0x1a   : > { %p816_p12 = scmp.lt.u32.totalorder %s807_s11, %s1015_s6 }
  0x1b   : > { %p811_p7 = pneg %p810_p6  ;;  %p815_p13 = por %p814_p10, %p813_p4 }
  0x1d   : > { %p817_p1 = por %p816_p12, %p815_p13 }
  0x1f   : > { %p818_p2 = pnand %p817_p1, %p811_p7 }
  0x21   : > { %821 = shalt.err (!%p818_p2)
}
  0x22   : > { %s822_s28 = scalar_lea.vmem %s1017_s8, 256  ;;  %s921_s29 = smov [#allocation2]  }
  0x23   : > { %p823_p3 = scmp.ne.s32.totalorder %s1017_s8, %s822_s28  ;;  %s827_s30 = sshll.u32 %s921_s29, 4  ;;  %s828_s30 = int_to_ptr.vmem [resolvable:$false] %s827_s30 }
  0x24   : > { %s829_s4 = scalar_lea.vmem %s828_s30, 512  ;;  %p830_p9 = scmp.lt.s32.totalorder %s1017_s8, %s828_s30 }
  0x25   : > { %p825_p6 = pnand %p823_p3, %p809_p5  ;;  %p831_p4 = scmp.lt.s32.totalorder %s829_s4, %s822_s28 }
  0x27   : > { %p826_p11 = pneg %p825_p6  ;;  %p832_p10 = por %p831_p4, %p830_p9 }
  0x29   : > { %p833_p12 = pnand %p832_p10, %p826_p11 }
  0x2b   : > { %836 = shalt.err (!%p833_p12)
}
  0x2c   : > { %743 = dma.hbm_to_vmem [thread:$0]  (!%p1021_p0), %s1015_s6, 256, %s1017_s8, %s154_s10  }
  0x2d   : > { %p1174_p1 = scmp.lt.s32.totalorder %s919_s17, 3  ;;  %p1175_p2 = scmp.ge.s32.totalorder %s919_s17, 1 }
  0x2f   : > { %p173_p5 = pnand %p1175_p2, %p1174_p1 }
  0x30   : > { %s1057_s5 = sand.u32 (!%p173_p5), 1, %s903_s13  }
  0x31   : > { %176 = sbr.rel (%p173_p5) target bundleno = 539 (0x21b), region = 32  ;;  %s697_s7 = sshll.u32 (!%p173_p5), %s1057_s5, 4 }
  0x32   : > { %s179_s11 = scalar_lea.sflag (!%p173_p5), [#allocation3], %s1057_s5  ;;  %s182_s18 = scalar_lea.vmem (!%p173_p5), [#allocation2], %s697_s7 }
  0x38   : > { %890 = dma.done.wait (%p993_p8), %s179_s11, 256  }
  0x39   : > { %892 = vsyncadd (%p993_p8), %s179_s11, 4294967040  ;;  %v922_v0 = vmov 0   ;;  %v208_v1 = vld [vmem:[%s182_s18] sm:$0xff]  ;;  %vm241_vm0 = vcmask 1041408   ;;  %v209_v2 = vld [vmem:[%s182_s18 + $0x8] sm:$0xff]  ;;  %vm234_vm1 = vcmask 31744  }
  0x3a   : > { %286 = vmatprep.mubr.bf16.mxu0 %v922_v0  ;;  %339 = vmatprep.mubr.bf16.mxu1 %v922_v0  ;;  %v212_v3 = vcombine.high %v208_v1, %v208_v1  ;;  %v213_v4 = vcombine.high %v209_v2, %v209_v2  ;;  %v216_v5 = vpack.c.bf16 %v208_v1, %v208_v1  ;;  %v803_v11 = vld [vmem:[%s1165_s1] sm:$0xff]   ;;  %v804_v12 = vld [vmem:[%s1165_s1 + $0x8] sm:$0xff]   ;;  %vm398_vm2 = vcmask 261120   ;;  %s698_s23 = sshll.u32 %s1057_s5, 6  ;;  %s735_s30 = sshll.u32 %s911_s15, 10 }
  0x3b   : > { %v218_v6 = vpack.c.bf16 %v209_v2, %v209_v2  ;;  %v805_v53 = vld [vmem:[%s1166_s2] sm:$0xff]   ;;  %v806_v54 = vld [vmem:[%s1166_s2 + $0x8] sm:$0xff]   ;;  %vm576_vm3 = vcmask 1043456   ;;  %vm577_vm4 = vcmask 130052   ;;  %s1090_s28 = scalar_lea.vmem [#allocation5], %s698_s23  ;;  %s1107_s11 = scalar_lea.hbm %s1167_s3, %s735_s30 }
  0x3c   : > { %v217_v7 = vpack.c.bf16 %v212_v3, %v212_v3  ;;  %v219_v8 = vpack.c.bf16 %v213_v4, %v213_v4  ;;  %v243_v9 = vsel %vm241_vm0, %v216_v5, 0  ;;  %vm1086_vm5 = vmor %vm577_vm4, %vm576_vm3  ;;  %s602_s29 = sshll.u32 %s1090_s28, 4  ;;  %s587_s15 = scalar_lea.sflag [#allocation4], %s1057_s5  ;;  %s1102_s29 = int_to_ptr.vmem [resolvable:$true] %s602_s29 }
  0x3d   : > { %v249_v10 = vsel %vm241_vm0, %v218_v6, 0  ;;  %s837_s18 = scalar_lea.vmem %s1102_s29, 1024  ;;  %p1178_p9 = scmp.ne.s32.totalorder %s1171_s25, 0 }
  0x3e   : > { %701 = vmatprep.subr.msk.bf16.mxu0 %vm241_vm0, %v217_v7  ;;  %704 = vmatprep.subr.msk.bf16.mxu1 %vm241_vm0, %v219_v8  ;;  %p838_p8 = scmp.ne.s32.totalorder %s1102_s29, %s837_s18  ;;  %s923_s24 = smov [#allocation5]  }
  0x3f   : > { %255 = vmatpush1.bf16.msra.mxu0 %v243_v9  ;;  %308 = vmatpush1.bf16.msra.mxu1 %v249_v10  ;;  %s841_s6 = sshll.u32 %s923_s24, 4  ;;  %s842_s6 = int_to_ptr.vmem [resolvable:$false] %s841_s6 }
  0x40   : > { %p839_p11 = pnand %p838_p8, %p1178_p9  ;;  %s843_s8 = scalar_lea.vmem %s842_s6, 2048 }
  0x41   : > { %p844_p7 = scmp.lt.s32.totalorder %s1102_s29, %s842_s6  ;;  %p845_p13 = scmp.lt.s32.totalorder %s843_s8, %s837_s18 }
  0x42   : > { %702 = vmatmul.mubr.msk.bf16.vlgmr.msra.gmra.mrb[0].mxu0 %vm234_vm1, %v803_v11  ;;  %705 = vmatmul.mubr.msk.bf16.vlgmr.msra.gmra.mrb[0].mxu1 %vm234_vm1, %v803_v11  ;;  %p840_p0 = pneg %p839_p11 }
  0x43   : > { %296 = vmatprep.mubr.bf16.mxu0 %v922_v0  ;;  %349 = vmatprep.mubr.bf16.mxu1 %v922_v0  ;;  %p846_p3 = por %p845_p13, %p844_p7 }
  0x45   : > { %p847_p6 = pnand %p846_p3, %p840_p0 }
  0x4a   : > { %703 = vmatmul.mubr.msk.bf16.gmra.mrb[4].mxu0 %vm234_vm1, %v804_v12  ;;  %706 = vmatmul.mubr.msk.bf16.gmra.mrb[4].mxu1 %vm234_vm1, %v804_v12 }
  0x4b   : > { %437 = vmatprep.mubr.bf16.mxu0 %v922_v0  ;;  %490 = vmatprep.mubr.bf16.mxu1 %v922_v0 }
 0x115   : > { %v288_v13 = vpop.f32.mrb[0].mxu0  ;;  %v341_v14 = vpop.f32.mrb[0].mxu1 }
 0x116   : > { %v290_v15 = vpop.f32.mrb[1].mxu0  ;;  %v343_v16 = vpop.f32.mrb[1].mxu1  ;;  %v360_v19 = vmax.f32 %v288_v13, 0.0  ;;  %v362_v20 = vmax.f32 %v341_v14, 0.0 }
 0x117   : > { %v292_v17 = vpop.f32.mrb[2].mxu0  ;;  %v345_v18 = vpop.f32.mrb[2].mxu1  ;;  %v361_v25 = vmax.f32 %v290_v15, 0.0  ;;  %v363_v26 = vmax.f32 %v343_v16, 0.0 }
 0x118   : > { %v364_v21 = vmax.f32 %v292_v17, 0.0  ;;  %v366_v22 = vmax.f32 %v345_v18, 0.0  ;;  %v294_v23 = vpop.f32.mrb[3].mxu0  ;;  %v347_v24 = vpop.f32.mrb[3].mxu1 }
 0x119   : > { %v365_v27 = vmax.f32 %v294_v23, 0.0  ;;  %v367_v28 = vmax.f32 %v347_v24, 0.0 }
 0x11a   : > { %v380_v29 = vpack.c.bf16 %v364_v21, %v360_v19  ;;  %v382_v30 = vpack.c.bf16 %v366_v22, %v362_v20 }
 0x11b   : > { %v381_v31 = vpack.c.bf16 %v365_v27, %v361_v25  ;;  %v383_v32 = vpack.c.bf16 %v367_v28, %v363_v26 }
 0x11d   : > { %v298_v33 = vpop.f32.mrb[4].mxu0  ;;  %v351_v34 = vpop.f32.mrb[4].mxu1  ;;  %405 = vmatprep.subr.bf16.mxu0 %v381_v31  ;;  %458 = vmatprep.subr.bf16.mxu1 %v383_v32 }
 0x11e   : > { %v300_v35 = vpop.f32.mrb[5].mxu0  ;;  %v353_v36 = vpop.f32.mrb[5].mxu1  ;;  %406 = vmatpush1.bf16.msra.mxu0 %v380_v29  ;;  %459 = vmatpush1.bf16.msra.mxu1 %v382_v30  ;;  %v368_v39 = vmax.f32 %v298_v33, 0.0  ;;  %v370_v40 = vmax.f32 %v351_v34, 0.0 }
 0x11f   : > { %v302_v37 = vpop.f32.mrb[6].mxu0  ;;  %v355_v38 = vpop.f32.mrb[6].mxu1  ;;  %v369_v45 = vmax.f32 %v300_v35, 0.0  ;;  %v371_v46 = vmax.f32 %v353_v36, 0.0 }
 0x120   : > { %v372_v41 = vmax.f32 %v302_v37, 0.0  ;;  %v374_v42 = vmax.f32 %v355_v38, 0.0  ;;  %v304_v43 = vpop.f32.mrb[7].mxu0  ;;  %v357_v44 = vpop.f32.mrb[7].mxu1 }
 0x121   : > { %v373_v47 = vmax.f32 %v304_v43, 0.0  ;;  %v375_v48 = vmax.f32 %v357_v44, 0.0 }
 0x122   : > { %v384_v49 = vpack.c.bf16 %v372_v41, %v368_v39  ;;  %v386_v50 = vpack.c.bf16 %v374_v42, %v370_v40 }
 0x123   : > { %v385_v51 = vpack.c.bf16 %v373_v47, %v369_v45  ;;  %v387_v52 = vpack.c.bf16 %v375_v48, %v371_v46 }
 0x125   : > { %407 = vmatprep.subr.bf16.mxu0 %v385_v51  ;;  %460 = vmatprep.subr.bf16.mxu1 %v387_v52 }
 0x126   : > { %408 = vmatpush1.bf16.msra.mxu0 %v384_v49  ;;  %461 = vmatpush1.bf16.msra.mxu1 %v386_v50 }
 0x129   : > { %709 = vmatmul.mubr.msk.bf16.vlgmr.msra.gmra.mrb[8].mxu0 %vm398_vm2, %v805_v53  ;;  %711 = vmatmul.mubr.msk.bf16.vlgmr.msra.gmra.mrb[8].mxu1 %vm398_vm2, %v805_v53 }
 0x12a   : > { %447 = vmatprep.mubr.bf16.mxu0 %v922_v0  ;;  %500 = vmatprep.mubr.bf16.mxu1 %v922_v0 }
 0x131   : > { %710 = vmatmul.mubr.msk.bf16.gmra.mrb[12].mxu0 %vm398_vm2, %v806_v54  ;;  %712 = vmatmul.mubr.msk.bf16.gmra.mrb[12].mxu1 %vm398_vm2, %v806_v54 }
 0x1fc   : > { %v439_v55 = vpop.f32.mrb[8].mxu0  ;;  %v492_v56 = vpop.f32.mrb[8].mxu1 }
 0x1fd   : > { %v511_v57 = vmax.f32 %v439_v55, 0.0  ;;  %v513_v58 = vmax.f32 %v492_v56, 0.0  ;;  %v441_v59 = vpop.f32.mrb[9].mxu0  ;;  %v494_v60 = vpop.f32.mrb[9].mxu1 }
 0x1fe   : > { %v512_v61 = vmax.f32 %v441_v59, 0.0  ;;  %v514_v62 = vmax.f32 %v494_v60, 0.0  ;;  %v443_v63 = vpop.f32.mrb[10].mxu0  ;;  %v496_v1 = vpop.f32.mrb[10].mxu1 }
 0x1ff   : > { %v515_v2 = vmax.f32 %v443_v63, 0.0  ;;  %v517_v3 = vmax.f32 %v496_v1, 0.0  ;;  %v445_v4 = vpop.f32.mrb[11].mxu0  ;;  %v498_v5 = vpop.f32.mrb[11].mxu1 }
 0x200   : > { %v727_v6 = vpack.c.bf16 %v512_v61, %v511_v57  ;;  %v728_v7 = vpack.c.bf16 %v514_v62, %v513_v58  ;;  %v516_v8 = vmax.f32 %v445_v4, 0.0  ;;  %v518_v9 = vmax.f32 %v498_v5, 0.0 }
 0x202   : > { %575 = vst [vmem:[%s1090_s28] sm:$0xff] %v727_v6  ;;  %579 = vst.msk [vmem:[%s1090_s28 + $0x8] sm:$0xff] %vm1086_vm5, %v728_v7  ;;  %v729_v10 = vpack.c.bf16 %v516_v8, %v515_v2  ;;  %v730_v11 = vpack.c.bf16 %v518_v9, %v517_v3 }
 0x204   : > { %580 = vst [vmem:[%s1090_s28 + $0x10] sm:$0xff] %v729_v10  ;;  %581 = vst.msk [vmem:[%s1090_s28 + $0x18] sm:$0xff] %vm1086_vm5, %v730_v11  ;;  %v449_v12 = vpop.f32.mrb[12].mxu0  ;;  %v502_v13 = vpop.f32.mrb[12].mxu1 }
 0x205   : > { %v519_v14 = vmax.f32 %v449_v12, 0.0  ;;  %v521_v15 = vmax.f32 %v502_v13, 0.0  ;;  %v451_v16 = vpop.f32.mrb[13].mxu0  ;;  %v504_v17 = vpop.f32.mrb[13].mxu1 }
 0x206   : > { %v520_v18 = vmax.f32 %v451_v16, 0.0  ;;  %v522_v19 = vmax.f32 %v504_v17, 0.0  ;;  %v453_v20 = vpop.f32.mrb[14].mxu0  ;;  %v506_v21 = vpop.f32.mrb[14].mxu1 }
 0x207   : > { %v523_v22 = vmax.f32 %v453_v20, 0.0  ;;  %v525_v23 = vmax.f32 %v506_v21, 0.0  ;;  %v455_v24 = vpop.f32.mrb[15].mxu0  ;;  %v508_v25 = vpop.f32.mrb[15].mxu1 }
 0x208   : > { %v731_v26 = vpack.c.bf16 %v520_v18, %v519_v14  ;;  %v732_v27 = vpack.c.bf16 %v522_v19, %v521_v15  ;;  %v524_v28 = vmax.f32 %v455_v24, 0.0  ;;  %v526_v29 = vmax.f32 %v508_v25, 0.0 }
 0x20a   : > { %582 = vst [vmem:[%s1090_s28 + $0x20] sm:$0xff] %v731_v26  ;;  %583 = vst.msk [vmem:[%s1090_s28 + $0x28] sm:$0xff] %vm1086_vm5, %v732_v27  ;;  %v733_v30 = vpack.c.bf16 %v524_v28, %v523_v22  ;;  %v734_v31 = vpack.c.bf16 %v526_v29, %v525_v23 }
 0x20c   : > { %584 = vst [vmem:[%s1090_s28 + $0x30] sm:$0xff] %v733_v30  ;;  %585 = vst.msk [vmem:[%s1090_s28 + $0x38] sm:$0xff] %vm1086_vm5, %v734_v31 }
 0x20d   : > { %850 = shalt.err (!%p847_p6)
}
 0x20e   : > { %s851_s9 = scalar_lea.hbm %s1107_s11, 1024  ;;  %s855_s21 = scalar_lea.hbm %s1167_s3, 2048 }
 0x20f   : > { %p852_p4 = scmp.ne.s32.totalorder %s1107_s11, %s851_s9  ;;  %p856_p1 = scmp.lt.u32.totalorder %s1107_s11, %s1167_s3 }
 0x210   : > { %p857_p2 = scmp.lt.u32.totalorder %s855_s21, %s851_s9  ;;  %p859_p8 = scmp.lt.u32.totalorder %s851_s9, %s1107_s11 }
 0x211   : > { %p853_p10 = pnand %p852_p4, %p1178_p9 }
 0x212   : > { %p858_p5 = por %p857_p2, %p856_p1 }
 0x213   : > { %p854_p12 = pneg %p853_p10 }
 0x214   : > { %p860_p11 = por %p859_p8, %p858_p5 }
 0x216   : > { %p861_p0 = pnand %p860_p11, %p854_p12 }
 0x218   : > { %864 = shalt.err (!%p861_p0)
}
 0x219   : > { %s924_s28 = smov 256   ;;  %s925_s30 = smov 16  }
 0x21a   : > { %738 = dma.vmem_to_hbm [thread:$0]  (%p1178_p9), %s1102_s29, 1024, %s1107_s11, %s587_s15, %s924_s28, %s924_s28, %s925_s30  }
 0x21b PF: > { %s617_s4 = sand.u32 1, %s899_s12   ;;  %p1179_p7 = scmp.ne.s32.totalorder %s1172_s27, 0 }
 0x21c   : > { %p1180_p13 = scmp.ge.s32.totalorder %s919_s17, 2  ;;  %s618_s7 = scalar_lea.sflag [#allocation4], %s617_s4 }
 0x21e   : > { %p745_p3 = pnand %p1180_p13, %p1179_p7 }
 0x220   : > { %894 = dma.done.wait (!%p745_p3), %s618_s7, 1024  }
 0x221   : > { %896 = vsyncadd (!%p745_p3), %s618_s7, 4294966272  ;;  %s19_s17 = sadd.s32 1, %s919_s17   ;;  %s1181_s12 = smov %s903_s13 }
 0x222   : > { %p16_p6 = scmp.ge.s32.totalorder %s19_s17, 4   ;;  %s1182_s13 = smov %s907_s14 }
 0x223   : > { %s1183_s14 = smov %s1002_s26  ;;  %s1184_s15 = smov %s915_s16 }
 0x224   : > { %s1185_s16 = smov %s1187_s20  ;;  %18 = sbr.rel (!%p16_p6) target bundleno = 6 (0x6), region = 77 }
 0x22b   :  { %623 = vsyncpa [#allocation3], 1 }
 0x22c   :  { %625 = vsyncpa [#allocation3 + $0x1], 1 }
 0x22d   :  { %626 = vsyncpa [#allocation4], 1 }
 0x22e   :  { %628 = vsyncpa [#allocation4 + $0x1], 1 }

</bundles_post_ra>
